<compile_context>
chip_gen: v7x
topology: tpu7x:2x2x1
jax: 0.10.0
libtpu: 0.0.40
codegen_flags: <defaults>
</compile_context>

<pallas_src>
import numpy as np

import jax
import jax.numpy as jnp
from jax.experimental import pallas as pl
from jax.experimental.pallas import tpu as pltpu

_LANE = 128
_SUBLANE = 8


def _round_up(x: int, m: int) -> int:
    return ((x + m - 1) // m) * m


# ---------------------------------------------------------------------------
# Pyramid-length schedule (pure Python over static shapes -> glue, not kernel)
# ---------------------------------------------------------------------------
def get_pyramid_lengths(total_length: int, ratio: float, scale: float):
    lengths = [int(total_length * ratio)]
    while lengths[-1] < total_length:
        lengths.append(int(lengths[-1] * scale))
        if lengths[-1] == lengths[-2]:
            lengths[-1] += 1
    lengths[-1] = total_length
    return lengths


# ---------------------------------------------------------------------------
# Two-tap weights of PyTorch F.interpolate(mode='linear', align_corners=False)
# ---------------------------------------------------------------------------
def _linear_interp_taps(l_in: int, l_out: int):
    if l_out == 0:
        z = np.zeros((0,), np.int64)
        return z, z, np.zeros((0,), np.float32)
    j = np.arange(l_out, dtype=np.float64)
    src = np.maximum((l_in / l_out) * (j + 0.5) - 0.5, 0.0)
    i0 = np.minimum(np.floor(src).astype(np.int64), l_in - 1)
    i1 = np.minimum(i0 + 1, l_in - 1)
    lam = (src - i0).astype(np.float32)
    return i0, i1, lam


def linear_interp_matrix(l_in: int, l_out: int) -> np.ndarray:
    """W of shape (l_in, l_out) such that x @ W == F.interpolate(x, size=l_out,
    mode='linear', align_corners=False)."""
    i0, i1, lam = _linear_interp_taps(l_in, l_out)
    cols = np.arange(l_out)
    w = np.zeros((l_in, l_out), np.float32)
    np.add.at(w, (i0, cols), (1.0 - lam))
    np.add.at(w, (i1, cols), lam)
    return w


# ---------------------------------------------------------------------------
# Pallas kernel: fused multi-level resize as one tiled (banded) MXU matmul
# ---------------------------------------------------------------------------
def _fused_pyramid_resize(x2d, w_all, kstart, *, tm, tn, kb, nk, m_inner,
                          out_dtype, compute_dtype, vmem_limit_bytes):
    m_pad, kp = x2d.shape
    kp_w, n_pad = w_all.shape
    assert kp == kp_w and n_pad % tn == 0
    grid_m = pl.cdiv(m_pad, tm)
    grid_n = n_pad // tn

    # Put the larger operand's index on the OUTER parallel axis so it is
    # re-used (no re-DMA) across the inner sweep when nk == 1.
    if m_inner:
        grid = (grid_n, grid_m, nk)
        x_map = lambda j, i, k, ks: (i, ks[j] + k)
        w_map = lambda j, i, k, ks: (ks[j] + k, j)
        o_map = lambda j, i, k, ks: (i, j)
    else:
        grid = (grid_m, grid_n, nk)
        x_map = lambda i, j, k, ks: (i, ks[j] + k)
        w_map = lambda i, j, k, ks: (ks[j] + k, j)
        o_map = lambda i, j, k, ks: (i, j)

    if nk == 1:
        # Full band resident in a single K step: write the output directly.
        def kernel(ks_ref, x_ref, w_ref, o_ref):
            a = x_ref[...].astype(compute_dtype)
            w = w_ref[...].astype(compute_dtype)
            o_ref[...] = jnp.dot(
                a, w, preferred_element_type=jnp.float32).astype(o_ref.dtype)
        scratch = []
    else:
        # Banded K: accumulate over the K grid axis in a VMEM f32 scratch.
        def kernel(ks_ref, x_ref, w_ref, o_ref, acc_ref):
            k = pl.program_id(2)

            @pl.when(k == 0)
            def _init():
                acc_ref[...] = jnp.zeros_like(acc_ref)

            a = x_ref[...].astype(compute_dtype)
            w = w_ref[...].astype(compute_dtype)
            acc_ref[...] += jnp.dot(a, w, preferred_element_type=jnp.float32)

            @pl.when(k == pl.num_programs(2) - 1)
            def _fin():
                o_ref[...] = acc_ref[...].astype(o_ref.dtype)
        scratch = [pltpu.VMEM((tm, tn), jnp.float32)]

    return pl.pallas_call(
        kernel,
        out_shape=jax.ShapeDtypeStruct((m_pad, n_pad), out_dtype),
        grid_spec=pltpu.PrefetchScalarGridSpec(
            num_scalar_prefetch=1,
            grid=grid,
            in_specs=[pl.BlockSpec((tm, kb), x_map),
                      pl.BlockSpec((kb, tn), w_map)],
            out_specs=pl.BlockSpec((tm, tn), o_map),
            scratch_shapes=scratch),
        compiler_params=pltpu.CompilerParams(
            dimension_semantics=("parallel", "parallel", "arbitrary"),
            vmem_limit_bytes=int(vmem_limit_bytes)),
    )(kstart, x2d, w_all)


# ---------------------------------------------------------------------------
# PyramidLengths forward
# ---------------------------------------------------------------------------
class PyramidLengthsPallas:
    """Pallas-TPU equivalent of the PyTorch PyramidLengths module
    (mode='linear', align_corners=False)."""

    _TN_CANDIDATES = (1024, 512, 384, 256, 128)   # lane-dense N-tile sizes
    _TM_MAX = 256                                  # M-tile cap
    _KB_BANDED = 256                               # K block for the banded plan
    _BANDED_LIN_THRESHOLD = 2048                   # auto-switch to banded K

    def __init__(self, ratio: float, scale: float, mode: str = "linear",
                 align_corners: bool = False,
                 recompute_scale_factor: bool = False,
                 preserve_aspect_ratio: bool = False,
                 precision: str = "float32", banded=None):
        assert mode == "linear" and not align_corners, \
            "only mode='linear', align_corners=False implemented"
        # recompute_scale_factor / preserve_aspect_ratio are no-ops for
        # fixed-size 1-D (height=1) linear resize.
        self.ratio = float(ratio)
        self.scale = float(scale)
        self.precision = precision
        self._banded = banded
        self._compute_dtype = (jnp.bfloat16 if precision == "bfloat16"
                               else jnp.float32)
        self._w_dtype = (jnp.bfloat16 if precision == "bfloat16"
                         else jnp.float32)
        self._cache = {}
        self._budget = None

    # ---- per-generation VMEM budget ------------------------------------
    def _vmem_budget(self) -> int:
        if self._budget is not None:
            return self._budget
        cap = 64 * 1024 * 1024          # conservative default (v7x per-TC)
        try:
            info = pltpu.get_tpu_info()
            c = getattr(info, "vmem_capacity_bytes", None)
            if c:
                cap = int(c)
        except Exception:
            pass
        self._budget = min(3 * cap // 4, 96 * 1024 * 1024)
        return self._budget

    # ---- static plan for one input length ------------------------------
    def _plan(self, l_in: int):
        cached = self._cache.get(l_in)
        if cached is not None:
            return cached

        lengths = get_pyramid_lengths(l_in, self.ratio, self.scale)
        resized = lengths[:-1]                  # last level == exact identity
        col = int(sum(resized))
        if not resized or col == 0:
            plan = dict(lengths=lengths, resized=resized, col=0,
                        col_offsets=[0] * len(resized))
            self._cache[l_in] = plan
            return plan

        budget = self._vmem_budget()
        wb = 2 if self.precision == "bfloat16" else 4

        # Banded-K only pays off (and only makes sense) for large L_in.
        use_banded = self._banded
        if use_banded is None:
            use_banded = l_in >= self._BANDED_LIN_THRESHOLD
        if l_in <= self._KB_BANDED:
            use_banded = False
        kb = self._KB_BANDED if use_banded else l_in

        # N tile: lane-dense, minimal tail padding, W tile <= ~1/3 of budget.
        tn_cap = max(_LANE, ((budget // 3) // (2 * kb * wb)) // _LANE * _LANE)
        cands = [t for t in self._TN_CANDIDATES if t <= tn_cap] or [_LANE]
        best = None
        for t in cands:
            key = (_round_up(col, t) - col, -t)
            if best is None or key < best[0]:
                best = (key, t)
        tn = best[1]
        n_pad = _round_up(col, tn)
        # Give v7x's two TensorCores >= 2 grid points when there is work,
        # but only if it does not increase padding.
        if n_pad // tn == 1 and n_pad >= 2 * _LANE:
            for t in sorted(set(cands + [_LANE]), reverse=True):
                if t < tn and _round_up(col, t) == n_pad:
                    tn = t
                    break
        n_pad = _round_up(col, tn)
        grid_n = n_pad // tn

        # Pack the per-level two-tap weights tightly (no per-level padding).
        k_pad = _round_up(l_in, kb) if use_banded else l_in
        w_all = np.zeros((k_pad, n_pad), np.float32)
        col_offsets, i0s, i1s, off = [], [], [], 0
        for l_out in resized:
            w_all[:l_in, off:off + l_out] = linear_interp_matrix(l_in, l_out)
            i0, i1, _ = _linear_interp_taps(l_in, l_out)
            i0s.append(i0)
            i1s.append(i1)
            col_offsets.append(off)
            off += l_out

        # Per-N-tile K band (in K-block units), scalar-prefetched into SMEM.
        if use_banded:
            i0_all = np.concatenate(i0s)
            i1_all = np.concatenate(i1s)
            total_kblk = k_pad // kb
            lo_blk = np.zeros((grid_n,), np.int64)
            nblk = np.ones((grid_n,), np.int64)
            for j in range(grid_n):
                a, b = j * tn, min((j + 1) * tn, col)
                lo = int(i0_all[a:b].min())
                hi = int(i1_all[a:b].max())
                lo_blk[j] = lo // kb
                nblk[j] = hi // kb - lo // kb + 1
            nk = int(nblk.max())
            kstart = np.minimum(lo_blk, total_kblk - nk).astype(np.int32)
        else:
            nk = 1
            kstart = np.zeros((grid_n,), np.int32)

        plan = dict(lengths=lengths, resized=resized, col=col,
                    col_offsets=col_offsets, tn=tn, n_pad=n_pad, kb=kb,
                    k_pad=k_pad, nk=nk, budget=budget,
                    w_all=jnp.asarray(w_all, dtype=self._w_dtype),
                    kstart=jnp.asarray(kstart))
        self._cache[l_in] = plan
        return plan

    # ---- forward --------------------------------------------------------
    def __call__(self, tensor: jax.Array):
        # tensor layout: (B, C, L) (NCL, matching the PyTorch 3-D linear case)
        b, c, l_in = tensor.shape
        plan = self._plan(l_in)
        lengths, resized = plan["lengths"], plan["resized"]

        out = {}
        if resized and plan["col"] > 0:
            m = b * c
            x2d = tensor.reshape(m, l_in)
            m_pad = _round_up(m, _SUBLANE)
            k_pad = plan["k_pad"]
            if m_pad > m or k_pad > l_in:
                x2d = jnp.pad(x2d, ((0, m_pad - m), (0, k_pad - l_in)))

            kb, tn, nk = plan["kb"], plan["tn"], plan["nk"]
            xb = tensor.dtype.itemsize
            wb = plan["w_all"].dtype.itemsize
            ob = tensor.dtype.itemsize

            # M tile: as big as fits the (double-buffered) footprint budget.
            tm = min(self._TM_MAX, m_pad)

            def footprint(tm_):
                f = 2 * tm_ * kb * xb + 2 * kb * tn * wb + 2 * tm_ * tn * ob
                if nk > 1:
                    f += tm_ * tn * 4
                return f

            while tm > _SUBLANE and footprint(tm) > plan["budget"]:
                tm = max(_SUBLANE, _round_up(tm // 2, _SUBLANE))

            # Re-use the larger operand across the inner grid sweep.
            w_bytes = plan["w_all"].size * wb
            x_bytes = m_pad * k_pad * xb
            m_inner = w_bytes >= x_bytes

            y = _fused_pyramid_resize(
                x2d, plan["w_all"], plan["kstart"],
                tm=tm, tn=tn, kb=kb, nk=nk, m_inner=m_inner,
                out_dtype=tensor.dtype, compute_dtype=self._compute_dtype,
                vmem_limit_bytes=plan["budget"])

            for i, (l_out, off) in enumerate(zip(resized, plan["col_offsets"])):
                out[f"level_{i}"] = y[:m, off:off + l_out].reshape(b, c, l_out)
        else:
            for i, l_out in enumerate(resized):    # only zero-length levels
                out[f"level_{i}"] = tensor[..., :l_out]

        # Final level: resize to the original length == exact identity.
        out[f"level_{len(lengths) - 1}"] = tensor
        return out


# ---------------------------------------------------------------------------
if __name__ == "__main__":
    key = jax.random.PRNGKey(0)
    B, C, L = 2, 4, 16
    x = jax.random.normal(key, (B, C, L), dtype=jnp.float32)

    module = PyramidLengthsPallas(ratio=0.25, scale=1.5, mode="linear",
                                  align_corners=False,
                                  recompute_scale_factor=False,
                                  preserve_aspect_ratio=False)
    out = module(x)
    out = jax.tree_util.tree_map(jax.block_until_ready, out)

    lengths = get_pyramid_lengths(L, 0.25, 1.5)
    assert len(out) == len(lengths), (len(out), len(lengths))
    x2d = np.asarray(x).reshape(B * C, L)
    for i, ln in enumerate(lengths[:-1]):
        got = np.asarray(out[f"level_{i}"])
        assert got.shape == (B, C, ln), got.shape
        ref = (x2d @ linear_interp_matrix(L, ln)).reshape(B, C, ln)
        assert float(np.max(np.abs(got - ref))) < 1e-5, (i, got, ref)
    assert np.array_equal(np.asarray(out[f"level_{len(lengths) - 1}"]),
                          np.asarray(x))

    # Banded-K / multi-K-accumulator path on a longer sequence.
    L2 = 512
    x2 = jax.random.normal(jax.random.PRNGKey(0), (B, C, L2),
                           dtype=jnp.float32)
    module_b = PyramidLengthsPallas(ratio=0.25, scale=1.5, banded=True)
    out2 = module_b(x2)
    out2 = jax.tree_util.tree_map(jax.block_until_ready, out2)
    lengths2 = get_pyramid_lengths(L2, 0.25, 1.5)
    x2d2 = np.asarray(x2).reshape(B * C, L2)
    for i, ln in enumerate(lengths2[:-1]):
        got = np.asarray(out2[f"level_{i}"])
        ref = (x2d2 @ linear_interp_matrix(L2, ln)).reshape(B, C, ln)
        assert got.shape == (B, C, ln), got.shape
        assert float(np.max(np.abs(got - ref))) < 1e-4, i
    assert np.array_equal(np.asarray(out2[f"level_{len(lengths2) - 1}"]),
                          np.asarray(x2))

    # Native bf16 I/O (no pre/post casts outside the kernel).
    xb16 = x.astype(jnp.bfloat16)
    outb = module(xb16)
    outb = jax.tree_util.tree_map(jax.block_until_ready, outb)
    assert outb["level_0"].dtype == jnp.bfloat16
    refb = (np.asarray(xb16, np.float32).reshape(B * C, L)
            @ linear_interp_matrix(L, lengths[0])).reshape(B, C, lengths[0])
    assert float(np.max(np.abs(np.asarray(outb["level_0"], np.float32)
                               - refb))) < 5e-2

    print("KERNEL_OK")
</pallas_src>

<mosaic_0001>
module attributes {stable_mosaic.version = 11 : i64} {
  func.func @kernel(%arg0: i32, %arg1: i32, %arg2: i32, %arg3: memref<1xi32, #tpu.memory_space<smem>>, %arg4: memref<8x16xf32, #tpu.memory_space<vmem>>, %arg5: memref<16x128xf32, #tpu.memory_space<vmem>>, %arg6: memref<8x128xf32, #tpu.memory_space<vmem>>) attributes {dimension_semantics = [#tpu.dimension_semantics<parallel>, #tpu.dimension_semantics<parallel>, #tpu.dimension_semantics<arbitrary>], iteration_bounds = array<i64: 1, 1, 1>, scalar_prefetch = 1 : i64, scratch_operands = 0 : i64, tpu.core_type = #tpu.core_type<tc>, window_params = [{transform_indices = @transform_0, window_bounds = array<i64: 8, 16>}, {transform_indices = @transform_1, window_bounds = array<i64: 16, 128>}, {transform_indices = @transform_2, window_bounds = array<i64: 8, 128>}]} {
    %c0 = arith.constant 0 : index
    %c0_0 = arith.constant 0 : index
    %0 = vector.load %arg4[%c0, %c0_0] : memref<8x16xf32, #tpu.memory_space<vmem>>, vector<8x16xf32>
    %c0_1 = arith.constant 0 : index
    %c0_2 = arith.constant 0 : index
    %1 = vector.load %arg5[%c0_1, %c0_2] : memref<16x128xf32, #tpu.memory_space<vmem>>, vector<16x128xf32>
    %cst = arith.constant dense<0.000000e+00> : vector<8x128xf32>
    %2 = tpu.matmul %0, %1, %cst {dimension_numbers = #tpu.dot_dimension_numbers<[1], [0], [0], [1], [0, 0, 1, 1], [], []>} : vector<8x16xf32>, vector<16x128xf32>, vector<8x128xf32> -> vector<8x128xf32>
    %c0_3 = arith.constant 0 : index
    %c0_4 = arith.constant 0 : index
    %3 = vector.load %arg6[%c0_3, %c0_4] : memref<8x128xf32, #tpu.memory_space<vmem>>, vector<8x128xf32>
    tpu.vector_store %arg6[%c0_3, %c0_4], %2 {strides = array<i32>} : memref<8x128xf32, #tpu.memory_space<vmem>>, vector<8x128xf32>,
    return
  }
  func.func @transform_0(%arg0: i32, %arg1: i32, %arg2: i32, %arg3: memref<1xi32, #tpu.memory_space<smem>>) -> (i32, i32) {
    %0 = arith.index_cast %arg0 : i32 to index
    %1 = memref.load %arg3[%0] : memref<1xi32, #tpu.memory_space<smem>>
    %2 = arith.addi %1, %arg2 : i32
    %c0_i32 = arith.constant 0 : i32
    return %arg1, %2 : i32, i32
  }
  func.func @transform_1(%arg0: i32, %arg1: i32, %arg2: i32, %arg3: memref<1xi32, #tpu.memory_space<smem>>) -> (i32, i32) {
    %0 = arith.index_cast %arg0 : i32 to index
    %1 = memref.load %arg3[%0] : memref<1xi32, #tpu.memory_space<smem>>
    %2 = arith.addi %1, %arg2 : i32
    %c0_i32 = arith.constant 0 : i32
    return %2, %arg0 : i32, i32
  }
  func.func @transform_2(%arg0: i32, %arg1: i32, %arg2: i32, %arg3: memref<1xi32, #tpu.memory_space<smem>>) -> (i32, i32) {
    %c0_i32 = arith.constant 0 : i32
    return %arg1, %arg0 : i32, i32
  }
}

</mosaic_0001>

<bundles_post_ra>
// kernel: tpu_custom_call.1
= control target key start
LH: loop header
LB: loop body
LE: loop exit
PB: predicated region body
PF: predicated region fallthrough
CT: control target
= control target key end

     0   :  { %9 = vsyncpa [#allocation5], 0  ;;  %s318_s0 = inlined_call_operand.<no memory space> [shape: s32[1], index: 0, kind: input, shape index: {}]   ;;  %s319_s1 = inlined_call_operand.hbm [shape: f32[8,16], index: 1, kind: input, shape index: {}]   ;;  %s320_s2 = inlined_call_operand.hbm [shape: f32[16,128], index: 2, kind: input, shape index: {}]   ;;  %s321_s3 = inlined_call_operand.hbm [shape: f32[8,128], index: 3, kind: output, shape index: {}]  }
   0x1   :  { %10 = vsyncpa [#allocation8], 0 }
   0x2   :  { %11 = vsyncpa [#allocation6], 0  ;;  %s152_s14 = sshll.u32 %s318_s0, 7  ;;  %s254_s18 = smov [#allocation4]  }
   0x3   :  { %s20_s17 = scalar_lea.hbm %s319_s1, %s152_s14  ;;  %s22_s19 = sshll.u32 %s254_s18, 4  ;;  %s23_s19 = int_to_ptr.vmem [resolvable:$true] %s22_s19 }
   0x4   :  { %s156_s22 = sshll.u32 %s318_s0, 8  ;;  %s178_s23 = scalar_lea.hbm %s20_s17, 128 }
   0x5   :  { %p179_p0 = scmp.ne.s32.totalorder %s20_s17, %s178_s23  ;;  %s180_s26 = scalar_lea.hbm %s319_s1, 128 }
   0x6   :  { %p181_p1 = scmp.lt.u32.totalorder %s20_s17, %s319_s1  ;;  %p182_p2 = scmp.lt.u32.totalorder %s180_s26, %s178_s23 }
   0x7   :  { %p184_p4 = scmp.lt.u32.totalorder %s178_s23, %s20_s17 }
   0x8   :  { %p183_p3 = por %p182_p2, %p181_p1 }
   0xa   :  { %p185_p5 = por %p184_p4, %p183_p3 }
   0xc   :  { %p186_p6 = pnand %p185_p5, %p179_p0 }
   0xe   :  { %189 = shalt.err (!%p186_p6)
}
   0xf   :  { %s190_s29 = scalar_lea.vmem %s23_s19, 128  ;;  %p195_p8 = scmp.lt.s32.totalorder %s23_s19, %s23_s19 }
  0x10   :  { %p191_p7 = scmp.ne.s32.totalorder %s23_s19, %s190_s29  ;;  %p196_p9 = scmp.lt.s32.totalorder %s190_s29, %s190_s29 }
  0x12   :  { %p197_p10 = por %p196_p9, %p195_p8 }
  0x14   :  { %p198_p11 = pnand %p197_p10, %p191_p7 }
  0x16   :  { %201 = shalt.err (!%p198_p11)
}
  0x17   :  { %25 = dma.hbm_to_vmem [thread:$0]  %s20_s17, 128, %s23_s19, [#allocation5]  }
  0x18   :  { %s35_s4 = scalar_lea.hbm %s320_s2, %s156_s22  ;;  %s255_s5 = smov [#allocation7]  }
  0x19   :  { %s36_s1 = sshll.u32 %s255_s5, 4  ;;  %s202_s6 = scalar_lea.hbm %s35_s4, 256  ;;  %s37_s1 = int_to_ptr.vmem [resolvable:$true] %s36_s1 }
  0x1a   :  { %p203_p12 = scmp.ne.s32.totalorder %s35_s4, %s202_s6  ;;  %s204_s9 = scalar_lea.hbm %s320_s2, 256 }
  0x1b   :  { %p205_p13 = scmp.lt.u32.totalorder %s35_s4, %s320_s2  ;;  %p206_p0 = scmp.lt.u32.totalorder %s204_s9, %s202_s6 }
  0x1c   :  { %p208_p2 = scmp.lt.u32.totalorder %s202_s6, %s35_s4 }
  0x1d   :  { %p207_p1 = por %p206_p0, %p205_p13 }
  0x1f   :  { %p209_p3 = por %p208_p2, %p207_p1 }
  0x21   :  { %p210_p4 = pnand %p209_p3, %p203_p12 }
  0x23   :  { %213 = shalt.err (!%p210_p4)
}
  0x24   :  { %s214_s12 = scalar_lea.vmem %s37_s1, 256  ;;  %p219_p6 = scmp.lt.s32.totalorder %s37_s1, %s37_s1 }
  0x25   :  { %p215_p5 = scmp.ne.s32.totalorder %s37_s1, %s214_s12  ;;  %p220_p7 = scmp.lt.s32.totalorder %s214_s12, %s214_s12 }
  0x27   :  { %p221_p8 = por %p220_p7, %p219_p6 }
  0x29   :  { %p222_p9 = pnand %p221_p8, %p215_p5 }
  0x2b   :  { %225 = shalt.err (!%p222_p9)
}
  0x2c   :  { %s256_s13 = smov 128   ;;  %s257_s14 = smov 8  }
  0x2d   :  { %42 = dma.hbm_to_vmem [thread:$0]  %s35_s4, 256, %s37_s1, [#allocation8], %s256_s13, %s256_s13, %s257_s14  }
  0x2e   :  { %248 = dma.done.wait [#allocation5], 128  }
  0x2f   :  { %249 = vsyncadd [#allocation5], 4294967168 }
  0x30   :  { %250 = dma.done.wait [#allocation8], 256  }
  0x31   :  { %251 = vsyncadd [#allocation8], 4294967040  ;;  %v258_v0 = vmov 0.0|0.0   ;;  %vm259_vm0 = vmmov 0   ;;  %v260_v1 = vmov 0.0   ;;  %v55_v2 = vld [vmem:[#allocation7] sm:$0xff] }
  0x32   :  { %167 = vmatprep.subr.bf16.mxu0 %v258_v0  ;;  %164 = vmatprep.mubr.msk.f32.mxu0 %vm259_vm0, %v260_v1  ;;  %v56_v3 = vld [vmem:[#allocation7 + $0x8] sm:$0xff]  ;;  %v54_v5 = vld [vmem:[#allocation4] sm:$0xff]  ;;  %vm57_vm1 = vcmask 130048   ;;  %s261_s2 = smov [#allocation9]  }
  0x33   :  { %v168_v4 = vpack.c.bf16 %v56_v3, %v55_v2  ;;  %s138_s15 = sshll.u32 %s261_s2, 4  ;;  %s139_s15 = int_to_ptr.vmem [resolvable:$true] %s138_s15 }
  0x34   :  { %s226_s16 = scalar_lea.vmem %s139_s15, 128  ;;  %p231_p11 = scmp.lt.s32.totalorder %s139_s15, %s139_s15 }
  0x35   :  { %169 = vmatpush3.bf16.msra.mxu0 %v168_v4  ;;  %p227_p10 = scmp.ne.s32.totalorder %s139_s15, %s226_s16  ;;  %p232_p12 = scmp.lt.s32.totalorder %s226_s16, %s226_s16 }
  0x37   :  { %p233_p13 = por %p232_p12, %p231_p11 }
  0x38   :  { %165 = vmatmul.mubr.msk.f32.vlgmr.msra.gmra.mrb[0].mxu0 %vm57_vm1, %v54_v5 }
  0x39   :  { %p234_p0 = pnand %p233_p13, %p227_p10 }
 0x10b   :  { %v127_v6 = vpop.f32.mrb[0].mxu0 }
 0x10c   :  { %131 = vst [vmem:[#allocation9] sm:$0xff] %v127_v6  ;;  %v166_v7 = vpop.f32.mrb[1].mxu0 }
 0x10d   :  { %237 = shalt.err (!%p234_p0)
}
 0x10e   :  { %s238_s19 = scalar_lea.hbm %s321_s3, 128 }
 0x10f   :  { %p239_p1 = scmp.ne.s32.totalorder %s321_s3, %s238_s19  ;;  %p242_p2 = scmp.lt.u32.totalorder %s238_s19, %s321_s3 }
 0x111   :  { %p244_p3 = pnand %p242_p2, %p239_p1 }
 0x113   :  { %247 = shalt.err (!%p244_p3)
}
 0x114   :  { %141 = dma.vmem_to_hbm [thread:$0]  %s139_s15, 128, %s321_s3, [#allocation6]  }
 0x115   :  { %252 = dma.done.wait [#allocation6], 128  }
 0x116   :  { %253 = vsyncadd [#allocation6], 4294967168 }
 0x117   :  { %145 = vsyncpa [#allocation5], 1 }
 0x118   :  { %146 = vsyncpa [#allocation8], 1 }
 0x119   :  { %147 = vsyncpa [#allocation6], 1 }

</bundles_post_ra>
